<compile_context>
chip_gen: v5e
topology: v5e:2x2
jax: 0.10.0
libtpu: 0.0.40
codegen_flags: <defaults>
</compile_context>

<pallas_src>
import jax
import jax.numpy as jnp
from jax.experimental import pallas as pl
from jax.experimental.pallas import tpu as pltpu

LANES = 128                      # lane dimension of every tile
MAX_ROW_TILE = 8192              # sublane rows per grid step (4 MiB f32/input)
VMEM_LIMIT_BYTES = 32 * 1024 * 1024  # 2 inputs x 2 buffers x 4 MiB needs >16 MiB


def _round_up(a: int, b: int) -> int:
    return ((a + b - 1) // b) * b


def _probe_complex_bitcast() -> bool:
    """True iff lax.bitcast_convert_type gives a working complex64->f32 view."""
    try:
        z = (jnp.arange(1.0, 9.0, dtype=jnp.float32)
             + 1j * jnp.arange(9.0, 17.0, dtype=jnp.float32)).astype(jnp.complex64)
        f = jax.lax.bitcast_convert_type(z, jnp.float32)
        return (f.shape == (8, 2)
                and bool(jnp.allclose(f[:, 0], jnp.real(z)))
                and bool(jnp.allclose(f[:, 1], jnp.imag(z))))
    except Exception:  # trace- or compile-time rejection -> use fallback path
        return False


_COMPLEX_BITCAST_OK = _probe_complex_bitcast()


def _make_kernel(row_tile: int, valid_rows: int, need_mask: bool):
    """Build the sum((a-b)^2) reduction kernel for a static tiling config."""

    def kernel(a_ref, b_ref, out_ref):
        j = pl.program_id(0)

        @pl.when(j == 0)
        def _():
            out_ref[...] = jnp.zeros_like(out_ref)

        d = a_ref[...] - b_ref[...]
        if need_mask:
            # Last block is partial: rows past `valid_rows` hold undefined
            # data and garbage in a/b would NOT cancel -> zero the diff.
            rid = j * row_tile + jax.lax.broadcasted_iota(
                jnp.int32, (row_tile, LANES), 0)
            d = jnp.where(rid < valid_rows, d, 0.0)
        sq = d * d
        # Tile-aligned fold: (row_tile, 128) -> (row_tile//8, 8, 128) groups
        # whole vregs, so the axis-0 sum is plain VALU adds (no XLU),
        # accumulated straight into the resident (8, 128) output block.
        out_ref[...] += sq.reshape(row_tile // 8, 8, LANES).sum(axis=0)

    return kernel


def _sum_sq_diff(a: jax.Array, b: jax.Array) -> jax.Array:
    """sum((a - b)^2) for equal-length flat float32 arrays (Pallas reduction)."""
    total_f = a.shape[0]

    if total_f % LANES != 0:
        # Rare ragged-lane case: pad both inputs with identical zeros so the
        # padded diffs are exactly 0.  This is the only path that copies.
        pad = _round_up(total_f, LANES) - total_f
        a = jnp.pad(a, (0, pad))
        b = jnp.pad(b, (0, pad))
        total_f += pad

    rows = total_f // LANES
    row_tile = min(MAX_ROW_TILE, _round_up(rows, 8))
    grid_j = pl.cdiv(rows, row_tile)
    need_mask = (rows % row_tile) != 0   # last block partial -> mask in-kernel

    a2 = a.reshape(rows, LANES)          # contiguous reshape: no copy
    b2 = b.reshape(rows, LANES)

    blk = pl.BlockSpec((row_tile, LANES), lambda j: (j, 0))

    partial = pl.pallas_call(
        _make_kernel(row_tile, rows, need_mask),
        out_shape=jax.ShapeDtypeStruct((8, LANES), jnp.float32),
        grid_spec=pltpu.PrefetchScalarGridSpec(
            num_scalar_prefetch=0,
            grid=(grid_j,),
            in_specs=[blk, blk],
            out_specs=pl.BlockSpec((8, LANES), lambda j: (0, 0)),
        ),
        compiler_params=pltpu.CompilerParams(
            dimension_semantics=("arbitrary",),   # reduction axis
            vmem_limit_bytes=VMEM_LIMIT_BYTES),
    )(a2, b2)

    # Final tiny (8, 128) cross-sublane/lane reduction done in plain JAX.
    return jnp.sum(partial)


@jax.jit
def complex_mse_loss(y: jax.Array, x: jax.Array) -> jax.Array:
    """mean((y.real - x.real)^2) + mean((y.imag - x.imag)^2)."""
    assert y.shape == x.shape
    n = y.size                      # number of complex elements (static)
    if n == 0:
        return jnp.float32(jnp.nan)   # torch mean over an empty tensor is NaN

    if (jnp.issubdtype(y.dtype, jnp.complexfloating)
            or jnp.issubdtype(x.dtype, jnp.complexfloating)):
        # TODO(synk): complex128 is computed in float32 here; PyTorch would
        # accumulate double-precision complex in float64.
        yc = y.astype(jnp.complex64)
        xc = x.astype(jnp.complex64)
        if _COMPLEX_BITCAST_OK:
            # Zero-cost reinterpret of the interleaved [re, im, ...] bytes.
            total = _sum_sq_diff(
                jax.lax.bitcast_convert_type(yc, jnp.float32).reshape(-1),
                jax.lax.bitcast_convert_type(xc, jnp.float32).reshape(-1))
        else:
            # Fallback: one fused real/imag plane extraction per input (the
            # minimum XLA requires without complex bitcast support); the two
            # component sums share the same Pallas kernel.
            total = (_sum_sq_diff(jnp.real(yc).reshape(-1),
                                  jnp.real(xc).reshape(-1))
                     + _sum_sq_diff(jnp.imag(yc).reshape(-1),
                                    jnp.imag(xc).reshape(-1)))
    else:
        # Real inputs: imaginary parts are identically zero on both sides.
        total = _sum_sq_diff(y.astype(jnp.float32).reshape(-1),
                             x.astype(jnp.float32).reshape(-1))

    # sum_real/n + sum_imag/n == total / n  (n = TRUE complex element count)
    return total * jnp.float32(1.0 / n)


if __name__ == "__main__":
    key = jax.random.PRNGKey(0)
    k1, k2, k3, k4 = jax.random.split(key, 4)

    shape = (2, 4, 16, 16)  # small NCHW-like complex inputs
    y = (jax.random.normal(k1, shape, jnp.float32)
         + 1j * jax.random.normal(k2, shape, jnp.float32)).astype(jnp.complex64)
    x = (jax.random.normal(k3, shape, jnp.float32)
         + 1j * jax.random.normal(k4, shape, jnp.float32)).astype(jnp.complex64)

    loss = complex_mse_loss(y, x)
    loss = jax.block_until_ready(loss)

    # Reference (plain JAX) check of the PyTorch semantics.
    ref = (jnp.mean((jnp.real(y) - jnp.real(x)) ** 2)
           + jnp.mean((jnp.imag(y) - jnp.imag(x)) ** 2))
    assert jnp.allclose(loss, ref, rtol=1e-5, atol=1e-5), (loss, ref)

    print("KERNEL_OK")
</pallas_src>

<mosaic_0001>
module attributes {stable_mosaic.version = 11 : i64} {
  func.func @kernel(%arg0: i32, %arg1: memref<16x128xf32, #tpu.memory_space<vmem>>, %arg2: memref<16x128xf32, #tpu.memory_space<vmem>>, %arg3: memref<8x128xf32, #tpu.memory_space<vmem>>) attributes {dimension_semantics = [#tpu.dimension_semantics<arbitrary>], iteration_bounds = array<i64: 1>, scalar_prefetch = 0 : i64, scratch_operands = 0 : i64, tpu.core_type = #tpu.core_type<tc>, window_params = [{transform_indices = @transform_0, window_bounds = array<i64: 16, 128>}, {transform_indices = @transform_1, window_bounds = array<i64: 16, 128>}, {pipeline_mode = #tpu.pipeline_mode<synchronous>, transform_indices = @transform_2, window_bounds = array<i64: 8, 128>}]} {
    %c0_i32 = arith.constant 0 : i32
    %0 = arith.cmpi eq, %arg0, %c0_i32 : i32
    %1 = arith.extui %0 : i1 to i32
    %c0_i32_0 = arith.constant 0 : i32
    %2 = arith.cmpi ne, %1, %c0_i32_0 : i32
    scf.if %2 {
      %cst_8 = arith.constant 0.000000e+00 : f32
      %12 = vector.broadcast %cst_8 : f32 to vector<8x128xf32>
      %c0_9 = arith.constant 0 : index
      %c0_10 = arith.constant 0 : index
      %13 = vector.load %arg3[%c0_9, %c0_10] : memref<8x128xf32, #tpu.memory_space<vmem>>, vector<8x128xf32>
      tpu.vector_store %arg3[%c0_9, %c0_10], %12 {strides = array<i32>} : memref<8x128xf32, #tpu.memory_space<vmem>>, vector<8x128xf32>,
    } else {
    }
    %c0 = arith.constant 0 : index
    %c0_1 = arith.constant 0 : index
    %3 = vector.load %arg1[%c0, %c0_1] : memref<16x128xf32, #tpu.memory_space<vmem>>, vector<16x128xf32>
    %c0_2 = arith.constant 0 : index
    %c0_3 = arith.constant 0 : index
    %4 = vector.load %arg2[%c0_2, %c0_3] : memref<16x128xf32, #tpu.memory_space<vmem>>, vector<16x128xf32>
    %5 = arith.subf %3, %4 : vector<16x128xf32>
    %6 = arith.mulf %5, %5 : vector<16x128xf32>
    %c0_4 = arith.constant 0 : index
    %c0_5 = arith.constant 0 : index
    %7 = vector.load %arg3[%c0_4, %c0_5] : memref<8x128xf32, #tpu.memory_space<vmem>>, vector<8x128xf32>
    %8 = vector.shape_cast %6 : vector<16x128xf32> to vector<2x8x128xf32>
    %cst = arith.constant dense<0.000000e+00> : vector<8x128xf32>
    %9 = vector.multi_reduction <add>, %8, %cst [0] : vector<2x8x128xf32> to vector<8x128xf32>
    %10 = arith.addf %7, %9 : vector<8x128xf32>
    %c0_6 = arith.constant 0 : index
    %c0_7 = arith.constant 0 : index
    %11 = vector.load %arg3[%c0_6, %c0_7] : memref<8x128xf32, #tpu.memory_space<vmem>>, vector<8x128xf32>
    tpu.vector_store %arg3[%c0_6, %c0_7], %10 {strides = array<i32>} : memref<8x128xf32, #tpu.memory_space<vmem>>, vector<8x128xf32>,
    return
  }
  func.func @transform_0(%arg0: i32) -> (i32, i32) {
    %c0_i32 = arith.constant 0 : i32
    %c0_i32_0 = arith.constant 0 : i32
    return %arg0, %c0_i32 : i32, i32
  }
  func.func @transform_1(%arg0: i32) -> (i32, i32) {
    %c0_i32 = arith.constant 0 : i32
    %c0_i32_0 = arith.constant 0 : i32
    return %arg0, %c0_i32 : i32, i32
  }
  func.func @transform_2(%arg0: i32) -> (i32, i32) {
    %c0_i32 = arith.constant 0 : i32
    %c0_i32_0 = arith.constant 0 : i32
    %c0_i32_1 = arith.constant 0 : i32
    return %c0_i32, %c0_i32_0 : i32, i32
  }
}

</mosaic_0001>

<bundles_post_ra>
// kernel: custom-call
= control target key start
LH: loop header
LB: loop body
LE: loop exit
PB: predicated region body
PF: predicated region fallthrough
CT: control target
= control target key end

     0   :  { %2 = vsyncpa [#allocation0], 0  ;;  %s55_s0 = inlined_call_operand.hbm [shape: c64[2,4,16,16], index: 0, kind: input, shape index: {}]   ;;  %s56_s1 = inlined_call_operand.vmem [shape: f32[2,4,16,16], index: 1, kind: output, shape index: {}]  }
   0x1   :  { %s4_s8 = sshll.u32 %s55_s0, 4  ;;  %s6_s11 = sshll.u32 %s56_s1, 4  ;;  %s5_s8 = int_to_ptr.hbm [resolvable:$true] %s4_s8  ;;  %s7_s11 = int_to_ptr.vmem [resolvable:$true] %s6_s11 }
   0x2   :  { %9 = dma.hbm_to_vmem [thread:$0]  %s5_s8, 2048, %s7_s11, [#allocation0] }
   0x3   :  { %37 = dma.done.wait [#allocation0], 2048  }
   0x4   :  { %38 = vsyncadd [#allocation0], 4294965248 }
   0x5   :  { %12 = vsyncpa [#allocation0], 1 }

// kernel: custom-call.1
= control target key start
LH: loop header
LB: loop body
LE: loop exit
PB: predicated region body
PF: predicated region fallthrough
CT: control target
= control target key end

     0   :  { %s56_s0 = inlined_call_operand.hbm [shape: c64[2,4,16,16], index: 0, kind: input, shape index: {}]   ;;  %s57_s1 = inlined_call_operand.vmem [shape: f32[2,4,16,16], index: 1, kind: output, shape index: {}]  }
   0x1   :  { %s2_s8 = scalar_lea.hbm %s56_s0, 128 }
   0x2   :  { %3 = vsyncpa [#allocation0], 0  ;;  %s5_s9 = sshll.u32 %s2_s8, 4  ;;  %s7_s12 = sshll.u32 %s57_s1, 4  ;;  %s6_s9 = int_to_ptr.hbm [resolvable:$true] %s5_s9  ;;  %s8_s12 = int_to_ptr.vmem [resolvable:$true] %s7_s12 }
   0x3   :  { %10 = dma.hbm_to_vmem [thread:$0]  %s6_s9, 2048, %s8_s12, [#allocation0] }
   0x4   :  { %38 = dma.done.wait [#allocation0], 2048  }
   0x5   :  { %39 = vsyncadd [#allocation0], 4294965248 }
   0x6   :  { %13 = vsyncpa [#allocation0], 1 }

// kernel: complex_mse_loss.2
= control target key start
LH: loop header
LB: loop body
LE: loop exit
PB: predicated region body
PF: predicated region fallthrough
CT: control target
= control target key end

     0   :  { %s63_s0 = inlined_call_operand.vmem [shape: f32[16,128], index: 0, kind: input, shape index: {}]   ;;  %s64_s1 = inlined_call_operand.vmem [shape: f32[16,128], index: 1, kind: input, shape index: {}]   ;;  %s65_s2 = inlined_call_operand.vmem [shape: f32[8,128], index: 2, kind: output, shape index: {}]  }
   0x1   :  { %v16_v0 = vld [vmem:[%s63_s0] sm:$0xff]  ;;  %v17_v1 = vld [vmem:[%s63_s0 + $0x8] sm:$0xff] }
   0x2   :  { %v18_v2 = vld [vmem:[%s64_s1] sm:$0xff]  ;;  %v19_v3 = vld [vmem:[%s64_s1 + $0x8] sm:$0xff] }
   0x3   :  { %v20_v4 = vsub.f32 %v16_v0, %v18_v2  ;;  %v21_v5 = vsub.f32 %v17_v1, %v19_v3 }
   0x5   :  { %v22_v6 = vmul.f32 %v20_v4, %v20_v4  ;;  %v23_v7 = vmul.f32 %v21_v5, %v21_v5 }
   0x7   :  { %v25_v8 = vadd.f32 %v23_v7, %v22_v6 }
   0x9   :  { %27 = vst [vmem:[%s65_s2] sm:$0xff] %v25_v8 }

</bundles_post_ra>
